<compile_context>
chip_gen: v5e
topology: v5e:2x2
jax: 0.10.0
libtpu: 0.0.40
codegen_flags: <defaults>
</compile_context>

<pallas_src>
import functools

import jax
import jax.numpy as jnp
from jax.experimental import pallas as pl
from jax.experimental.pallas import tpu as pltpu


def _round_up(x, m):
    return (x + m - 1) // m * m


# ------------------------------ Pallas kernels -------------------------------
def _conv_stats_kernel(a_ref, w_ref, y_ref, stats_ref, *, fuse_relu):
    """One M-tile of the im2col matmul + per-tile BN partial statistics.

    a_ref:     (TM, K)       bf16 im2col rows for this tile
    w_ref:     (K, Coutp)    bf16 reshaped conv weight (zero-padded channels)
    y_ref:     (TM, Coutp)   f32 conv output tile
    stats_ref: (1, 2, Coutp) f32 per-tile [sum; sum-of-squares] per channel
    """
    y = jnp.dot(a_ref[...], w_ref[...], preferred_element_type=jnp.float32)
    ssum = jnp.sum(y, axis=0, keepdims=True)        # (1, Coutp)
    ssq = jnp.sum(y * y, axis=0, keepdims=True)     # (1, Coutp)
    stats_ref[...] = jnp.concatenate([ssum, ssq], axis=0).reshape(stats_ref.shape)
    if fuse_relu:                                   # only when BN is disabled
        y = jnp.maximum(y, 0.0)
    y_ref[...] = y


def _bn_relu_kernel(y_ref, scale_ref, shift_ref, o_ref, *, fuse_relu):
    """Apply the global BatchNorm affine transform (+ optional ReLU) per tile."""
    out = y_ref[...] * scale_ref[...] + shift_ref[...]
    if fuse_relu:
        out = jnp.maximum(out, 0.0)
    o_ref[...] = out.astype(o_ref.dtype)


# ------------------------------ Python wrapper -------------------------------
def basic_conv_forward(x, weight, gamma=None, beta=None, *, stride=1, padding=0,
                       dilation=1, relu=True, bn=True, eps=1e-5,
                       compute_dtype=jnp.bfloat16, tile_m=512):
    """BasicConv forward.  x: (N, Cin, H, W) NCHW; weight: (Cout, Cin, KH, KW)."""
    N, Cin, H, W = x.shape
    Cout, Cin_w, KH, KW = weight.shape
    assert Cin == Cin_w, "groups != 1 not supported"  # TODO(synk): grouped conv
    # TODO(synk): conv bias not supported (BasicConv default is bias=False).

    Ho = (H + 2 * padding - dilation * (KH - 1) - 1) // stride + 1
    Wo = (W + 2 * padding - dilation * (KW - 1) - 1) // stride + 1
    M = N * Ho * Wo
    K = Cin * KH * KW
    Coutp = _round_up(Cout, 128)            # lane-dense output / MXU N dim
    TM = min(tile_m, _round_up(M, 8))       # ~512-row tiles, multiple of 8
    Mp = _round_up(M, TM)
    num_tiles = Mp // TM

    # ---- glue (plain JAX, fused by XLA): NHWC + im2col built directly in bf16
    # TODO(synk): fold the patch extraction into the kernel (shifted-window
    # index_map / manual DMA) to avoid the KH*KW-duplicated A in HBM.
    x_nhwc = jnp.transpose(x, (0, 2, 3, 1)).astype(compute_dtype)
    x_pad = jnp.pad(x_nhwc, ((0, 0), (padding, padding), (padding, padding), (0, 0)))
    cols = []
    for kh in range(KH):
        for kw in range(KW):
            h0, w0 = kh * dilation, kw * dilation
            cols.append(x_pad[:, h0:h0 + stride * Ho:stride,
                              w0:w0 + stride * Wo:stride, :])   # (N, Ho, Wo, Cin)
    patches = jnp.stack(cols, axis=-1)                          # (N, Ho, Wo, Cin, KH*KW)
    A = patches.reshape(M, K)
    A = jnp.pad(A, ((0, Mp - M), (0, 0)))                       # zero rows: stats unaffected

    Wmat = weight.reshape(Cout, K).T.astype(compute_dtype)      # (K, Cout), (cin,kh,kw) order
    Wmat = jnp.pad(Wmat, ((0, 0), (0, Coutp - Cout)))           # zero-padded channels

    # ---- pass 1: tiled matmul (MXU, bf16) + per-tile BN partial sums --------
    bytes_accessed = (Mp * K * 2 + K * Coutp * 2 + Mp * Coutp * 4
                      + num_tiles * 2 * Coutp * 4)
    y_flat, stats = pl.pallas_call(
        functools.partial(_conv_stats_kernel, fuse_relu=(relu and not bn)),
        out_shape=(
            jax.ShapeDtypeStruct((Mp, Coutp), jnp.float32),
            jax.ShapeDtypeStruct((num_tiles, 2, Coutp), jnp.float32),
        ),
        grid=(num_tiles,),
        in_specs=[
            pl.BlockSpec((TM, K), lambda i: (i, 0)),
            pl.BlockSpec((K, Coutp), lambda i: (0, 0)),
        ],
        out_specs=(
            pl.BlockSpec((TM, Coutp), lambda i: (i, 0)),
            pl.BlockSpec((1, 2, Coutp), lambda i: (i, 0, 0)),
        ),
        compiler_params=pltpu.CompilerParams(dimension_semantics=("parallel",)),
        cost_estimate=pl.CostEstimate(flops=2 * Mp * K * Coutp, transcendentals=0,
                                      bytes_accessed=bytes_accessed),
    )(A, Wmat)

    if bn:
        # ---- finalize global batch statistics (tiny, plain JAX) ------------
        sums = jnp.sum(stats[:, 0, :], axis=0)              # (Coutp,)
        sumsqs = jnp.sum(stats[:, 1, :], axis=0)
        mean = sums / M                                      # true M (padded rows are zero)
        var = jnp.maximum(sumsqs / M - mean * mean, 0.0)     # biased var (train mode)
        inv_std = jax.lax.rsqrt(var + eps)
        gamma_p = jnp.pad(gamma.astype(jnp.float32).reshape(-1), (0, Coutp - Cout))
        beta_p = jnp.pad(beta.astype(jnp.float32).reshape(-1), (0, Coutp - Cout))
        scale = (gamma_p * inv_std).reshape(1, Coutp)
        shift = (beta_p - mean * gamma_p * inv_std).reshape(1, Coutp)

        # ---- pass 2: apply BN affine + ReLU, tiled over M -------------------
        out_flat = pl.pallas_call(
            functools.partial(_bn_relu_kernel, fuse_relu=relu),
            out_shape=jax.ShapeDtypeStruct((Mp, Coutp), jnp.float32),
            grid=(num_tiles,),
            in_specs=[
                pl.BlockSpec((TM, Coutp), lambda i: (i, 0)),
                pl.BlockSpec((1, Coutp), lambda i: (0, 0)),
                pl.BlockSpec((1, Coutp), lambda i: (0, 0)),
            ],
            out_specs=pl.BlockSpec((TM, Coutp), lambda i: (i, 0)),
            compiler_params=pltpu.CompilerParams(dimension_semantics=("parallel",)),
        )(y_flat, scale, shift)
    else:
        out_flat = y_flat

    out = out_flat[:M, :Cout].reshape(N, Ho, Wo, Cout).transpose(0, 3, 1, 2)
    return out


# ------------------------------ Reference (JAX) ------------------------------
def _reference(x, weight, gamma, beta, *, stride, padding, dilation, relu, bn,
               eps, compute_dtype):
    y = jax.lax.conv_general_dilated(
        x.astype(compute_dtype), weight.astype(compute_dtype),
        window_strides=(stride, stride),
        padding=((padding, padding), (padding, padding)),
        rhs_dilation=(dilation, dilation),
        dimension_numbers=("NCHW", "OIHW", "NCHW"),
        preferred_element_type=jnp.float32)
    if bn:
        mean = jnp.mean(y, axis=(0, 2, 3), keepdims=True)
        var = jnp.mean((y - mean) ** 2, axis=(0, 2, 3), keepdims=True)
        y = gamma.reshape(1, -1, 1, 1) * (y - mean) * jax.lax.rsqrt(var + eps) \
            + beta.reshape(1, -1, 1, 1)
    if relu:
        y = jnp.maximum(y, 0.0)
    return y


if __name__ == "__main__":
    # BasicConv(in_planes=4, out_planes=8, kernel_size=3, stride=1, padding=1,
    #           relu=True, bn=True, bias=False)
    N, Cin, H, W = 2, 4, 16, 16
    Cout, KH, KW = 8, 3, 3
    stride, padding, dilation = 1, 1, 1

    key = jax.random.PRNGKey(0)
    kx, kwgt, kg, kb = jax.random.split(key, 4)
    x = jax.random.normal(kx, (N, Cin, H, W), dtype=jnp.float32)
    weight = jax.random.normal(kwgt, (Cout, Cin, KH, KW), dtype=jnp.float32) * 0.1
    gamma = 1.0 + 0.1 * jax.random.normal(kg, (Cout,), dtype=jnp.float32)
    beta = 0.1 * jax.random.normal(kb, (Cout,), dtype=jnp.float32)

    fwd = jax.jit(functools.partial(basic_conv_forward, stride=stride,
                                    padding=padding, dilation=dilation,
                                    relu=True, bn=True))
    out = jax.block_until_ready(fwd(x, weight, gamma, beta))

    ref = _reference(x, weight, gamma, beta, stride=stride, padding=padding,
                     dilation=dilation, relu=True, bn=True, eps=1e-5,
                     compute_dtype=jnp.bfloat16)
    assert out.shape == (N, Cout, H, W)
    assert jnp.allclose(out, ref, atol=1e-3, rtol=1e-3), "mismatch vs reference"
    print("KERNEL_OK")
</pallas_src>

<mosaic_0001>
module attributes {stable_mosaic.version = 11 : i64} {
  func.func @_conv_stats_kernel(%arg0: i32, %arg1: memref<512x36xbf16, #tpu.memory_space<vmem>>, %arg2: memref<36x128xbf16, #tpu.memory_space<vmem>>, %arg3: memref<512x128xf32, #tpu.memory_space<vmem>>, %arg4: memref<1x2x128xf32, #tpu.memory_space<vmem>>) attributes {dimension_semantics = [#tpu.dimension_semantics<parallel>], iteration_bounds = array<i64: 1>, scalar_prefetch = 0 : i64, scratch_operands = 0 : i64, tpu.core_type = #tpu.core_type<tc>, window_params = [{transform_indices = @transform_0, window_bounds = array<i64: 512, 36>}, {pipeline_mode = #tpu.pipeline_mode<synchronous>, transform_indices = @transform_1, window_bounds = array<i64: 36, 128>}, {transform_indices = @transform_2, window_bounds = array<i64: 512, 128>}, {transform_indices = @transform_3, window_bounds = array<i64: 1, 2, 128>}]} {
    %c0 = arith.constant 0 : index
    %c0_0 = arith.constant 0 : index
    %0 = vector.load %arg1[%c0, %c0_0] : memref<512x36xbf16, #tpu.memory_space<vmem>>, vector<512x36xbf16>
    %c0_1 = arith.constant 0 : index
    %c0_2 = arith.constant 0 : index
    %1 = vector.load %arg2[%c0_1, %c0_2] : memref<36x128xbf16, #tpu.memory_space<vmem>>, vector<36x128xbf16>
    %cst = arith.constant dense<0.000000e+00> : vector<512x128xf32>
    %2 = tpu.matmul %0, %1, %cst {dimension_numbers = #tpu.dot_dimension_numbers<[1], [0], [0], [1], [0, 0, 1, 1], [], []>} : vector<512x36xbf16>, vector<36x128xbf16>, vector<512x128xf32> -> vector<512x128xf32>
    %cst_3 = arith.constant dense<0.000000e+00> : vector<128xf32>
    %3 = vector.multi_reduction <add>, %2, %cst_3 [0] : vector<512x128xf32> to vector<128xf32>
    %4 = vector.shape_cast %3 : vector<128xf32> to vector<1x128xf32>
    %5 = arith.mulf %2, %2 : vector<512x128xf32>
    %cst_4 = arith.constant dense<0.000000e+00> : vector<128xf32>
    %6 = vector.multi_reduction <add>, %5, %cst_4 [0] : vector<512x128xf32> to vector<128xf32>
    %7 = vector.shape_cast %6 : vector<128xf32> to vector<1x128xf32>
    %8 = tpu.concatenate %4, %7 in 0 : vector<1x128xf32>, vector<1x128xf32> -> vector<2x128xf32>
    %9 = vector.shape_cast %8 : vector<2x128xf32> to vector<1x2x128xf32>
    %c0_5 = arith.constant 0 : index
    %c0_6 = arith.constant 0 : index
    %c0_7 = arith.constant 0 : index
    %10 = vector.load %arg4[%c0_5, %c0_6, %c0_7] : memref<1x2x128xf32, #tpu.memory_space<vmem>>, vector<1x2x128xf32>
    tpu.vector_store %arg4[%c0_5, %c0_6, %c0_7], %9 {strides = array<i32>} : memref<1x2x128xf32, #tpu.memory_space<vmem>>, vector<1x2x128xf32>,
    %c0_8 = arith.constant 0 : index
    %c0_9 = arith.constant 0 : index
    %11 = vector.load %arg3[%c0_8, %c0_9] : memref<512x128xf32, #tpu.memory_space<vmem>>, vector<512x128xf32>
    tpu.vector_store %arg3[%c0_8, %c0_9], %2 {strides = array<i32>} : memref<512x128xf32, #tpu.memory_space<vmem>>, vector<512x128xf32>,
    return
  }
  func.func @transform_0(%arg0: i32) -> (i32, i32) {
    %c0_i32 = arith.constant 0 : i32
    %c0_i32_0 = arith.constant 0 : i32
    return %arg0, %c0_i32 : i32, i32
  }
  func.func @transform_1(%arg0: i32) -> (i32, i32) {
    %c0_i32 = arith.constant 0 : i32
    %c0_i32_0 = arith.constant 0 : i32
    %c0_i32_1 = arith.constant 0 : i32
    return %c0_i32, %c0_i32_0 : i32, i32
  }
  func.func @transform_2(%arg0: i32) -> (i32, i32) {
    %c0_i32 = arith.constant 0 : i32
    %c0_i32_0 = arith.constant 0 : i32
    return %arg0, %c0_i32 : i32, i32
  }
  func.func @transform_3(%arg0: i32) -> (i32, i32, i32) {
    %c0_i32 = arith.constant 0 : i32
    %c0_i32_0 = arith.constant 0 : i32
    %c0_i32_1 = arith.constant 0 : i32
    return %arg0, %c0_i32, %c0_i32_0 : i32, i32, i32
  }
}

module attributes {stable_mosaic.version = 11 : i64} {
  func.func @_bn_relu_kernel(%arg0: i32, %arg1: memref<512x128xf32, #tpu.memory_space<vmem>>, %arg2: memref<1x128xf32, #tpu.memory_space<vmem>>, %arg3: memref<1x128xf32, #tpu.memory_space<vmem>>, %arg4: memref<512x128xf32, #tpu.memory_space<vmem>>) attributes {dimension_semantics = [#tpu.dimension_semantics<parallel>], iteration_bounds = array<i64: 1>, scalar_prefetch = 0 : i64, scratch_operands = 0 : i64, tpu.core_type = #tpu.core_type<tc>, window_params = [{transform_indices = @transform_0, window_bounds = array<i64: 512, 128>}, {pipeline_mode = #tpu.pipeline_mode<synchronous>, transform_indices = @transform_1, window_bounds = array<i64: 1, 128>}, {pipeline_mode = #tpu.pipeline_mode<synchronous>, transform_indices = @transform_2, window_bounds = array<i64: 1, 128>}, {transform_indices = @transform_3, window_bounds = array<i64: 512, 128>}]} {
    %c0 = arith.constant 0 : index
    %c0_0 = arith.constant 0 : index
    %0 = vector.load %arg1[%c0, %c0_0] : memref<512x128xf32, #tpu.memory_space<vmem>>, vector<512x128xf32>
    %c0_1 = arith.constant 0 : index
    %c0_2 = arith.constant 0 : index
    %1 = vector.load %arg2[%c0_1, %c0_2] : memref<1x128xf32, #tpu.memory_space<vmem>>, vector<1x128xf32>
    %2 = vector.broadcast %1 : vector<1x128xf32> to vector<512x128xf32>
    %3 = arith.mulf %0, %2 : vector<512x128xf32>
    %c0_3 = arith.constant 0 : index
    %c0_4 = arith.constant 0 : index
    %4 = vector.load %arg3[%c0_3, %c0_4] : memref<1x128xf32, #tpu.memory_space<vmem>>, vector<1x128xf32>
    %5 = vector.broadcast %4 : vector<1x128xf32> to vector<512x128xf32>
    %6 = arith.addf %3, %5 : vector<512x128xf32>
    %cst = arith.constant 0.000000e+00 : f32
    %7 = vector.broadcast %cst : f32 to vector<512x128xf32>
    %8 = arith.maximumf %6, %7 : vector<512x128xf32>
    %c0_5 = arith.constant 0 : index
    %c0_6 = arith.constant 0 : index
    %9 = vector.load %arg4[%c0_5, %c0_6] : memref<512x128xf32, #tpu.memory_space<vmem>>, vector<512x128xf32>
    tpu.vector_store %arg4[%c0_5, %c0_6], %8 {strides = array<i32>} : memref<512x128xf32, #tpu.memory_space<vmem>>, vector<512x128xf32>,
    return
  }
  func.func @transform_0(%arg0: i32) -> (i32, i32) {
    %c0_i32 = arith.constant 0 : i32
    %c0_i32_0 = arith.constant 0 : i32
    return %arg0, %c0_i32 : i32, i32
  }
  func.func @transform_1(%arg0: i32) -> (i32, i32) {
    %c0_i32 = arith.constant 0 : i32
    %c0_i32_0 = arith.constant 0 : i32
    %c0_i32_1 = arith.constant 0 : i32
    return %c0_i32, %c0_i32_0 : i32, i32
  }
  func.func @transform_2(%arg0: i32) -> (i32, i32) {
    %c0_i32 = arith.constant 0 : i32
    %c0_i32_0 = arith.constant 0 : i32
    %c0_i32_1 = arith.constant 0 : i32
    return %c0_i32, %c0_i32_0 : i32, i32
  }
  func.func @transform_3(%arg0: i32) -> (i32, i32) {
    %c0_i32 = arith.constant 0 : i32
    %c0_i32_0 = arith.constant 0 : i32
    return %arg0, %c0_i32 : i32, i32
  }
}

</mosaic_0001>

<bundles_post_ra>
// kernel: basic_conv_forward.3
= control target key start
LH: loop header
LB: loop body
LE: loop exit
PB: predicated region body
PF: predicated region fallthrough
CT: control target
= control target key end

     0   :  { %s893_s0 = inlined_call_operand.vmem [shape: f32[512,128], index: 0, kind: input, shape index: {}]   ;;  %s894_s1 = inlined_call_operand.vmem [shape: f32[1,128], index: 1, kind: input, shape index: {}]   ;;  %s895_s2 = inlined_call_operand.vmem [shape: f32[1,128], index: 2, kind: input, shape index: {}]   ;;  %s896_s3 = inlined_call_operand.vmem [shape: f32[512,128], index: 3, kind: output, shape index: {}]  }
   0x1   :  { %v14_v0 = vld [vmem:[%s893_s0] sm:$0xff]  ;;  %v15_v3 = vld [vmem:[%s893_s0 + $0x8] sm:$0xff]  ;;  %v16_v6 = vld [vmem:[%s893_s0 + $0x10] sm:$0xff] }
   0x2   :  { %v374_v1 = vld [vmem:[%s894_s1] ss:$0 sm:$0xff]  ;;  %v17_v7 = vld [vmem:[%s893_s0 + $0x18] sm:$0xff]  ;;  %v19_v12 = vld [vmem:[%s893_s0 + $0x28] sm:$0xff] }
   0x3   :  { %v379_v2 = vld [vmem:[%s895_s2] ss:$0 sm:$0xff]  ;;  %v82_v4 = vmul.f32 %v374_v1, %v14_v0  ;;  %v83_v5 = vmul.f32 %v374_v1, %v15_v3  ;;  %v84_v9 = vmul.f32 %v374_v1, %v16_v6  ;;  %v85_v10 = vmul.f32 %v374_v1, %v17_v7  ;;  %v20_v13 = vld [vmem:[%s893_s0 + $0x30] sm:$0xff]  ;;  %v21_v14 = vld [vmem:[%s893_s0 + $0x38] sm:$0xff] }
   0x4   :  { %v18_v8 = vld [vmem:[%s893_s0 + $0x20] sm:$0xff]  ;;  %v87_v17 = vmul.f32 %v374_v1, %v19_v12  ;;  %v88_v18 = vmul.f32 %v374_v1, %v20_v13  ;;  %v89_v22 = vmul.f32 %v374_v1, %v21_v14  ;;  %v23_v24 = vld [vmem:[%s893_s0 + $0x48] sm:$0xff]  ;;  %v24_v29 = vld [vmem:[%s893_s0 + $0x50] sm:$0xff] }
   0x5   :  { %v86_v11 = vmul.f32 %v374_v1, %v18_v8  ;;  %v150_v15 = vadd.f32 %v379_v2, %v82_v4  ;;  %v151_v16 = vadd.f32 %v379_v2, %v83_v5  ;;  %v152_v19 = vadd.f32 %v379_v2, %v84_v9  ;;  %v22_v23 = vld [vmem:[%s893_s0 + $0x40] sm:$0xff]  ;;  %v25_v30 = vld [vmem:[%s893_s0 + $0x58] sm:$0xff]  ;;  %v27_v35 = vld [vmem:[%s893_s0 + $0x68] sm:$0xff] }
   0x6   :  { %v153_v20 = vadd.f32 %v379_v2, %v85_v10  ;;  %v155_v27 = vadd.f32 %v379_v2, %v87_v17  ;;  %v156_v28 = vadd.f32 %v379_v2, %v88_v18  ;;  %v26_v31 = vld [vmem:[%s893_s0 + $0x60] sm:$0xff]  ;;  %v157_v34 = vadd.f32 %v379_v2, %v89_v22  ;;  %v28_v36 = vld [vmem:[%s893_s0 + $0x70] sm:$0xff]  ;;  %v29_v41 = vld [vmem:[%s893_s0 + $0x78] sm:$0xff] }
   0x7   :  { %v154_v21 = vadd.f32 %v379_v2, %v86_v11  ;;  %v214_v25 = vmax.f32 %v150_v15, 0.0  ;;  %v215_v26 = vmax.f32 %v151_v16, 0.0  ;;  %v216_v32 = vmax.f32 %v152_v19, 0.0  ;;  %v30_v54 = vld [vmem:[%s893_s0 + $0x80] sm:$0xff]  ;;  %v31_v55 = vld [vmem:[%s893_s0 + $0x88] sm:$0xff]  ;;  %v32_v58 = vld [vmem:[%s893_s0 + $0x90] sm:$0xff] }
   0x8   :  { %v217_v33 = vmax.f32 %v153_v20, 0.0  ;;  %v219_v38 = vmax.f32 %v155_v27, 0.0  ;;  %v90_v39 = vmul.f32 %v374_v1, %v22_v23  ;;  %v91_v40 = vmul.f32 %v374_v1, %v23_v24  ;;  %v33_v59 = vld [vmem:[%s893_s0 + $0x98] sm:$0xff]  ;;  %v34_v62 = vld [vmem:[%s893_s0 + $0xa0] sm:$0xff]  ;;  %v35_v5 = vld [vmem:[%s893_s0 + $0xa8] sm:$0xff] }
   0x9   :  { %278 = vst [vmem:[%s896_s3] sm:$0xff] %v214_v25  ;;  %v218_v37 = vmax.f32 %v154_v21, 0.0  ;;  %v220_v42 = vmax.f32 %v156_v28, 0.0  ;;  %v92_v43 = vmul.f32 %v374_v1, %v24_v29  ;;  %v93_v44 = vmul.f32 %v374_v1, %v25_v30  ;;  %v36_v10 = vld [vmem:[%s893_s0 + $0xb0] sm:$0xff]  ;;  %v37_v14 = vld [vmem:[%s893_s0 + $0xb8] sm:$0xff]  ;;  %v38_v18 = vld [vmem:[%s893_s0 + $0xc0] sm:$0xff] }
   0xa   :  { %279 = vst [vmem:[%s896_s3 + $0x8] sm:$0xff] %v215_v26  ;;  %v94_v45 = vmul.f32 %v374_v1, %v26_v31  ;;  %v158_v46 = vadd.f32 %v379_v2, %v90_v39  ;;  %v159_v47 = vadd.f32 %v379_v2, %v91_v40  ;;  %v95_v48 = vmul.f32 %v374_v1, %v27_v35  ;;  %v39_v22 = vld [vmem:[%s893_s0 + $0xc8] sm:$0xff]  ;;  %v40_v26 = vld [vmem:[%s893_s0 + $0xd0] sm:$0xff]  ;;  %v41_v30 = vld [vmem:[%s893_s0 + $0xd8] sm:$0xff] }
   0xb   :  { %280 = vst [vmem:[%s896_s3 + $0x10] sm:$0xff] %v216_v32  ;;  %v96_v49 = vmul.f32 %v374_v1, %v28_v36  ;;  %v221_v50 = vmax.f32 %v157_v34, 0.0  ;;  %v160_v51 = vadd.f32 %v379_v2, %v92_v43  ;;  %v161_v52 = vadd.f32 %v379_v2, %v93_v44  ;;  %v42_v34 = vld [vmem:[%s893_s0 + $0xe0] sm:$0xff] }
   0xc   :  { %281 = vst [vmem:[%s896_s3 + $0x18] sm:$0xff] %v217_v33  ;;  %v97_v53 = vmul.f32 %v374_v1, %v29_v41  ;;  %v222_v56 = vmax.f32 %v158_v46, 0.0  ;;  %v162_v57 = vadd.f32 %v379_v2, %v94_v45  ;;  %v223_v60 = vmax.f32 %v159_v47, 0.0  ;;  %v45_v46 = vld [vmem:[%s893_s0 + $0xf8] sm:$0xff] }
   0xd   :  { %282 = vst [vmem:[%s896_s3 + $0x20] sm:$0xff] %v218_v37  ;;  %v163_v61 = vadd.f32 %v379_v2, %v95_v48  ;;  %v224_v63 = vmax.f32 %v160_v51, 0.0  ;;  %v164_v0 = vadd.f32 %v379_v2, %v96_v49  ;;  %v98_v3 = vmul.f32 %v374_v1, %v30_v54  ;;  %v47_v54 = vld [vmem:[%s893_s0 + $0x108] sm:$0xff] }
   0xe   :  { %283 = vst [vmem:[%s896_s3 + $0x28] sm:$0xff] %v219_v38  ;;  %v99_v4 = vmul.f32 %v374_v1, %v31_v55  ;;  %v225_v6 = vmax.f32 %v161_v52, 0.0  ;;  %v165_v7 = vadd.f32 %v379_v2, %v97_v53  ;;  %v100_v8 = vmul.f32 %v374_v1, %v32_v58  ;;  %v43_v38 = vld [vmem:[%s893_s0 + $0xe8] sm:$0xff]  ;;  %v48_v58 = vld [vmem:[%s893_s0 + $0x110] sm:$0xff] }
   0xf   :  { %284 = vst [vmem:[%s896_s3 + $0x30] sm:$0xff] %v220_v42  ;;  %v101_v9 = vmul.f32 %v374_v1, %v33_v59  ;;  %v226_v11 = vmax.f32 %v162_v57, 0.0  ;;  %v166_v12 = vadd.f32 %v379_v2, %v98_v3  ;;  %v102_v13 = vmul.f32 %v374_v1, %v34_v62  ;;  %v44_v42 = vld [vmem:[%s893_s0 + $0xf0] sm:$0xff]  ;;  %v49_v62 = vld [vmem:[%s893_s0 + $0x118] sm:$0xff] }
  0x10   :  { %285 = vst [vmem:[%s896_s3 + $0x38] sm:$0xff] %v221_v50  ;;  %v227_v15 = vmax.f32 %v163_v61, 0.0  ;;  %v167_v16 = vadd.f32 %v379_v2, %v99_v4  ;;  %v103_v17 = vmul.f32 %v374_v1, %v35_v5  ;;  %v228_v19 = vmax.f32 %v164_v0, 0.0  ;;  %v46_v50 = vld [vmem:[%s893_s0 + $0x100] sm:$0xff] }
  0x11   :  { %286 = vst [vmem:[%s896_s3 + $0x40] sm:$0xff] %v222_v56  ;;  %v168_v20 = vadd.f32 %v379_v2, %v100_v8  ;;  %v104_v21 = vmul.f32 %v374_v1, %v36_v10  ;;  %v229_v23 = vmax.f32 %v165_v7, 0.0  ;;  %v169_v24 = vadd.f32 %v379_v2, %v101_v9  ;;  %v50_v4 = vld [vmem:[%s893_s0 + $0x120] sm:$0xff]  ;;  %v51_v8 = vld [vmem:[%s893_s0 + $0x128] sm:$0xff] }
  0x12   :  { %287 = vst [vmem:[%s896_s3 + $0x48] sm:$0xff] %v223_v60  ;;  %v105_v25 = vmul.f32 %v374_v1, %v37_v14  ;;  %v230_v27 = vmax.f32 %v166_v12, 0.0  ;;  %v170_v28 = vadd.f32 %v379_v2, %v102_v13  ;;  %v106_v29 = vmul.f32 %v374_v1, %v38_v18  ;;  %v52_v12 = vld [vmem:[%s893_s0 + $0x130] sm:$0xff] }
  0x13   :  { %288 = vst [vmem:[%s896_s3 + $0x50] sm:$0xff] %v224_v63  ;;  %v231_v31 = vmax.f32 %v167_v16, 0.0  ;;  %v171_v32 = vadd.f32 %v379_v2, %v103_v17  ;;  %v107_v33 = vmul.f32 %v374_v1, %v39_v22  ;;  %v232_v35 = vmax.f32 %v168_v20, 0.0  ;;  %v53_v16 = vld [vmem:[%s893_s0 + $0x138] sm:$0xff]  ;;  %v54_v20 = vld [vmem:[%s893_s0 + $0x140] sm:$0xff] }
  0x14   :  { %289 = vst [vmem:[%s896_s3 + $0x58] sm:$0xff] %v225_v6  ;;  %v172_v36 = vadd.f32 %v379_v2, %v104_v21  ;;  %v108_v37 = vmul.f32 %v374_v1, %v40_v26  ;;  %v233_v39 = vmax.f32 %v169_v24, 0.0  ;;  %v173_v40 = vadd.f32 %v379_v2, %v105_v25  ;;  %v55_v24 = vld [vmem:[%s893_s0 + $0x148] sm:$0xff] }
  0x15   :  { %290 = vst [vmem:[%s896_s3 + $0x60] sm:$0xff] %v226_v11  ;;  %v109_v41 = vmul.f32 %v374_v1, %v41_v30  ;;  %v234_v43 = vmax.f32 %v170_v28, 0.0  ;;  %v174_v44 = vadd.f32 %v379_v2, %v106_v29  ;;  %v110_v45 = vmul.f32 %v374_v1, %v42_v34  ;;  %v56_v28 = vld [vmem:[%s893_s0 + $0x150] sm:$0xff] }
  0x16   :  { %291 = vst [vmem:[%s896_s3 + $0x68] sm:$0xff] %v227_v15  ;;  %v235_v47 = vmax.f32 %v171_v32, 0.0  ;;  %v175_v48 = vadd.f32 %v379_v2, %v107_v33  ;;  %v111_v49 = vmul.f32 %v374_v1, %v43_v38  ;;  %v236_v51 = vmax.f32 %v172_v36, 0.0  ;;  %v57_v32 = vld [vmem:[%s893_s0 + $0x158] sm:$0xff]  ;;  %v58_v36 = vld [vmem:[%s893_s0 + $0x160] sm:$0xff] }
  0x17   :  { %292 = vst [vmem:[%s896_s3 + $0x70] sm:$0xff] %v228_v19  ;;  %v176_v52 = vadd.f32 %v379_v2, %v108_v37  ;;  %v112_v53 = vmul.f32 %v374_v1, %v44_v42  ;;  %v237_v55 = vmax.f32 %v173_v40, 0.0  ;;  %v177_v56 = vadd.f32 %v379_v2, %v109_v41  ;;  %v59_v40 = vld [vmem:[%s893_s0 + $0x168] sm:$0xff] }
  0x18   :  { %293 = vst [vmem:[%s896_s3 + $0x78] sm:$0xff] %v229_v23  ;;  %v113_v57 = vmul.f32 %v374_v1, %v45_v46  ;;  %v238_v59 = vmax.f32 %v174_v44, 0.0  ;;  %v178_v60 = vadd.f32 %v379_v2, %v110_v45  ;;  %v114_v61 = vmul.f32 %v374_v1, %v46_v50  ;;  %v60_v44 = vld [vmem:[%s893_s0 + $0x170] sm:$0xff] }
  0x19   :  { %294 = vst [vmem:[%s896_s3 + $0x80] sm:$0xff] %v230_v27  ;;  %v239_v63 = vmax.f32 %v175_v48, 0.0  ;;  %v179_v0 = vadd.f32 %v379_v2, %v111_v49  ;;  %v115_v3 = vmul.f32 %v374_v1, %v47_v54  ;;  %v240_v5 = vmax.f32 %v176_v52, 0.0  ;;  %v61_v48 = vld [vmem:[%s893_s0 + $0x178] sm:$0xff]  ;;  %v62_v52 = vld [vmem:[%s893_s0 + $0x180] sm:$0xff] }
  0x1a   :  { %295 = vst [vmem:[%s896_s3 + $0x88] sm:$0xff] %v231_v31  ;;  %v180_v6 = vadd.f32 %v379_v2, %v112_v53  ;;  %v116_v7 = vmul.f32 %v374_v1, %v48_v58  ;;  %v241_v9 = vmax.f32 %v177_v56, 0.0  ;;  %v181_v10 = vadd.f32 %v379_v2, %v113_v57  ;;  %v63_v56 = vld [vmem:[%s893_s0 + $0x188] sm:$0xff] }
  0x1b   :  { %296 = vst [vmem:[%s896_s3 + $0x90] sm:$0xff] %v232_v35  ;;  %v117_v11 = vmul.f32 %v374_v1, %v49_v62  ;;  %v242_v13 = vmax.f32 %v178_v60, 0.0  ;;  %v182_v14 = vadd.f32 %v379_v2, %v114_v61  ;;  %v118_v15 = vmul.f32 %v374_v1, %v50_v4  ;;  %v64_v60 = vld [vmem:[%s893_s0 + $0x190] sm:$0xff] }
  0x1c   :  { %297 = vst [vmem:[%s896_s3 + $0x98] sm:$0xff] %v233_v39  ;;  %v243_v17 = vmax.f32 %v179_v0, 0.0  ;;  %v183_v18 = vadd.f32 %v379_v2, %v115_v3  ;;  %v119_v19 = vmul.f32 %v374_v1, %v51_v8  ;;  %v244_v21 = vmax.f32 %v180_v6, 0.0  ;;  %v65_v0 = vld [vmem:[%s893_s0 + $0x198] sm:$0xff] }
  0x1d   :  { %298 = vst [vmem:[%s896_s3 + $0xa0] sm:$0xff] %v234_v43  ;;  %v184_v22 = vadd.f32 %v379_v2, %v116_v7  ;;  %v120_v23 = vmul.f32 %v374_v1, %v52_v12  ;;  %v245_v25 = vmax.f32 %v181_v10, 0.0  ;;  %v185_v26 = vadd.f32 %v379_v2, %v117_v11  ;;  %v77_v3 = vld [vmem:[%s893_s0 + $0x1f8] sm:$0xff]  ;;  %v66_v7 = vld [vmem:[%s893_s0 + $0x1a0] sm:$0xff]  ;;  %v67_v11 = vld [vmem:[%s893_s0 + $0x1a8] sm:$0xff] }
  0x1e   :  { %299 = vst [vmem:[%s896_s3 + $0xa8] sm:$0xff] %v235_v47  ;;  %v121_v27 = vmul.f32 %v374_v1, %v53_v16  ;;  %v246_v29 = vmax.f32 %v182_v14, 0.0  ;;  %v186_v30 = vadd.f32 %v379_v2, %v118_v15  ;;  %v122_v31 = vmul.f32 %v374_v1, %v54_v20  ;;  %v68_v15 = vld [vmem:[%s893_s0 + $0x1b0] sm:$0xff]  ;;  %v69_v20 = vld [vmem:[%s893_s0 + $0x1b8] sm:$0xff] }
  0x1f   :  { %300 = vst [vmem:[%s896_s3 + $0xb0] sm:$0xff] %v236_v51  ;;  %v247_v33 = vmax.f32 %v183_v18, 0.0  ;;  %v187_v34 = vadd.f32 %v379_v2, %v119_v19  ;;  %v123_v35 = vmul.f32 %v374_v1, %v55_v24  ;;  %v248_v37 = vmax.f32 %v184_v22, 0.0  ;;  %v70_v24 = vld [vmem:[%s893_s0 + $0x1c0] sm:$0xff] }
  0x20   :  { %301 = vst [vmem:[%s896_s3 + $0xb8] sm:$0xff] %v237_v55  ;;  %v188_v38 = vadd.f32 %v379_v2, %v120_v23  ;;  %v124_v39 = vmul.f32 %v374_v1, %v56_v28  ;;  %v249_v41 = vmax.f32 %v185_v26, 0.0  ;;  %v189_v42 = vadd.f32 %v379_v2, %v121_v27 }
  0x21   :  { %302 = vst [vmem:[%s896_s3 + $0xc0] sm:$0xff] %v238_v59  ;;  %v125_v43 = vmul.f32 %v374_v1, %v57_v32  ;;  %v250_v45 = vmax.f32 %v186_v30, 0.0  ;;  %v190_v46 = vadd.f32 %v379_v2, %v122_v31  ;;  %v126_v47 = vmul.f32 %v374_v1, %v58_v36 }
  0x22   :  { %303 = vst [vmem:[%s896_s3 + $0xc8] sm:$0xff] %v239_v63  ;;  %v251_v49 = vmax.f32 %v187_v34, 0.0  ;;  %v191_v50 = vadd.f32 %v379_v2, %v123_v35  ;;  %v127_v51 = vmul.f32 %v374_v1, %v59_v40  ;;  %v252_v53 = vmax.f32 %v188_v38, 0.0 }
  0x23   :  { %304 = vst [vmem:[%s896_s3 + $0xd0] sm:$0xff] %v240_v5  ;;  %v192_v54 = vadd.f32 %v379_v2, %v124_v39  ;;  %v128_v55 = vmul.f32 %v374_v1, %v60_v44  ;;  %v253_v57 = vmax.f32 %v189_v42, 0.0  ;;  %v193_v58 = vadd.f32 %v379_v2, %v125_v43 }
  0x24   :  { %305 = vst [vmem:[%s896_s3 + $0xd8] sm:$0xff] %v241_v9  ;;  %v129_v59 = vmul.f32 %v374_v1, %v61_v48  ;;  %v254_v61 = vmax.f32 %v190_v46, 0.0  ;;  %v194_v62 = vadd.f32 %v379_v2, %v126_v47  ;;  %v130_v63 = vmul.f32 %v374_v1, %v62_v52 }
  0x25   :  { %306 = vst [vmem:[%s896_s3 + $0xe0] sm:$0xff] %v242_v13  ;;  %v255_v4 = vmax.f32 %v191_v50, 0.0  ;;  %v195_v5 = vadd.f32 %v379_v2, %v127_v51  ;;  %v131_v6 = vmul.f32 %v374_v1, %v63_v56  ;;  %v256_v8 = vmax.f32 %v192_v54, 0.0 }
  0x26   :  { %307 = vst [vmem:[%s896_s3 + $0xe8] sm:$0xff] %v243_v17  ;;  %v196_v9 = vadd.f32 %v379_v2, %v128_v55  ;;  %v132_v10 = vmul.f32 %v374_v1, %v64_v60  ;;  %v257_v12 = vmax.f32 %v193_v58, 0.0  ;;  %v197_v13 = vadd.f32 %v379_v2, %v129_v59 }
  0x27   :  { %308 = vst [vmem:[%s896_s3 + $0xf0] sm:$0xff] %v244_v21  ;;  %v133_v14 = vmul.f32 %v374_v1, %v65_v0  ;;  %v145_v16 = vmul.f32 %v374_v1, %v77_v3  ;;  %v258_v17 = vmax.f32 %v194_v62, 0.0  ;;  %v198_v18 = vadd.f32 %v379_v2, %v130_v63 }
  0x28   :  { %309 = vst [vmem:[%s896_s3 + $0xf8] sm:$0xff] %v245_v25  ;;  %v134_v19 = vmul.f32 %v374_v1, %v66_v7  ;;  %v259_v21 = vmax.f32 %v195_v5, 0.0  ;;  %v199_v22 = vadd.f32 %v379_v2, %v131_v6  ;;  %v135_v23 = vmul.f32 %v374_v1, %v67_v11 }
  0x29   :  { %310 = vst [vmem:[%s896_s3 + $0x100] sm:$0xff] %v246_v29  ;;  %v784_v25 = vadd.f32 %v379_v2, %v145_v16  ;;  %v260_v26 = vmax.f32 %v196_v9, 0.0  ;;  %v200_v27 = vadd.f32 %v379_v2, %v132_v10  ;;  %v136_v28 = vmul.f32 %v374_v1, %v68_v15  ;;  %v71_v29 = vld [vmem:[%s893_s0 + $0x1c8] sm:$0xff] }
  0x2a   :  { %311 = vst [vmem:[%s896_s3 + $0x108] sm:$0xff] %v247_v33  ;;  %v261_v30 = vmax.f32 %v197_v13, 0.0  ;;  %v201_v31 = vadd.f32 %v379_v2, %v133_v14  ;;  %v137_v32 = vmul.f32 %v374_v1, %v69_v20  ;;  %v72_v33 = vld [vmem:[%s893_s0 + $0x1d0] sm:$0xff]  ;;  %v262_v34 = vmax.f32 %v198_v18, 0.0 }
  0x2b   :  { %312 = vst [vmem:[%s896_s3 + $0x110] sm:$0xff] %v248_v37  ;;  %v202_v35 = vadd.f32 %v379_v2, %v134_v19  ;;  %v138_v36 = vmul.f32 %v374_v1, %v70_v24  ;;  %v73_v37 = vld [vmem:[%s893_s0 + $0x1d8] sm:$0xff]  ;;  %v263_v38 = vmax.f32 %v199_v22, 0.0  ;;  %v203_v39 = vadd.f32 %v379_v2, %v135_v23 }
  0x2c   :  { %313 = vst [vmem:[%s896_s3 + $0x118] sm:$0xff] %v249_v41  ;;  %v139_v40 = vmul.f32 %v374_v1, %v71_v29  ;;  %v74_v41 = vld [vmem:[%s893_s0 + $0x1e0] sm:$0xff]  ;;  %v264_v42 = vmax.f32 %v200_v27, 0.0  ;;  %v204_v43 = vadd.f32 %v379_v2, %v136_v28  ;;  %v140_v44 = vmul.f32 %v374_v1, %v72_v33 }
  0x2d   :  { %314 = vst [vmem:[%s896_s3 + $0x120] sm:$0xff] %v250_v45  ;;  %v75_v45 = vld [vmem:[%s893_s0 + $0x1e8] sm:$0xff]  ;;  %v265_v46 = vmax.f32 %v201_v31, 0.0  ;;  %v205_v47 = vadd.f32 %v379_v2, %v137_v32  ;;  %v141_v48 = vmul.f32 %v374_v1, %v73_v37  ;;  %v266_v50 = vmax.f32 %v202_v35, 0.0 }
  0x2e   :  { %315 = vst [vmem:[%s896_s3 + $0x128] sm:$0xff] %v251_v49  ;;  %v76_v49 = vld [vmem:[%s893_s0 + $0x1f0] sm:$0xff]  ;;  %v206_v51 = vadd.f32 %v379_v2, %v138_v36  ;;  %v142_v52 = vmul.f32 %v374_v1, %v74_v41  ;;  %v207_v54 = vadd.f32 %v379_v2, %v139_v40  ;;  %v143_v55 = vmul.f32 %v374_v1, %v75_v45 }
  0x2f   :  { %316 = vst [vmem:[%s896_s3 + $0x130] sm:$0xff] %v252_v53  ;;  %v267_v53 = vmax.f32 %v203_v39, 0.0  ;;  %v268_v56 = vmax.f32 %v204_v43, 0.0  ;;  %v144_v58 = vmul.f32 %v374_v1, %v76_v49  ;;  %v269_v59 = vmax.f32 %v205_v47, 0.0 }
  0x30   :  { %317 = vst [vmem:[%s896_s3 + $0x138] sm:$0xff] %v253_v57  ;;  %v208_v57 = vadd.f32 %v379_v2, %v140_v44  ;;  %v209_v60 = vadd.f32 %v379_v2, %v141_v48  ;;  %v210_v62 = vadd.f32 %v379_v2, %v142_v52  ;;  %v271_v63 = vmax.f32 %v207_v54, 0.0 }
  0x31   :  { %318 = vst [vmem:[%s896_s3 + $0x140] sm:$0xff] %v254_v61  ;;  %v270_v61 = vmax.f32 %v206_v51, 0.0  ;;  %v211_v1 = vadd.f32 %v379_v2, %v143_v55  ;;  %v212_v3 = vadd.f32 %v379_v2, %v144_v58  ;;  %v277_v7 = vmax.f32 %v784_v25, 0.0 }
  0x32   :  { %319 = vst [vmem:[%s896_s3 + $0x148] sm:$0xff] %v255_v4  ;;  %v272_v0 = vmax.f32 %v208_v57, 0.0  ;;  %v273_v4 = vmax.f32 %v209_v60, 0.0  ;;  %v274_v5 = vmax.f32 %v210_v62, 0.0 }
  0x33   :  { %320 = vst [vmem:[%s896_s3 + $0x150] sm:$0xff] %v256_v8  ;;  %v275_v6 = vmax.f32 %v211_v1, 0.0  ;;  %v276_v2 = vmax.f32 %v212_v3, 0.0 }
  0x34   :  { %321 = vst [vmem:[%s896_s3 + $0x158] sm:$0xff] %v257_v12 }
  0x35   :  { %322 = vst [vmem:[%s896_s3 + $0x160] sm:$0xff] %v258_v17 }
  0x36   :  { %323 = vst [vmem:[%s896_s3 + $0x168] sm:$0xff] %v259_v21 }
  0x37   :  { %324 = vst [vmem:[%s896_s3 + $0x170] sm:$0xff] %v260_v26 }
  0x38   :  { %325 = vst [vmem:[%s896_s3 + $0x178] sm:$0xff] %v261_v30 }
  0x39   :  { %326 = vst [vmem:[%s896_s3 + $0x180] sm:$0xff] %v262_v34 }
  0x3a   :  { %327 = vst [vmem:[%s896_s3 + $0x188] sm:$0xff] %v263_v38 }
  0x3b   :  { %328 = vst [vmem:[%s896_s3 + $0x190] sm:$0xff] %v264_v42 }
  0x3c   :  { %329 = vst [vmem:[%s896_s3 + $0x198] sm:$0xff] %v265_v46 }
  0x3d   :  { %330 = vst [vmem:[%s896_s3 + $0x1a0] sm:$0xff] %v266_v50 }
  0x3e   :  { %331 = vst [vmem:[%s896_s3 + $0x1a8] sm:$0xff] %v267_v53 }
  0x3f   :  { %332 = vst [vmem:[%s896_s3 + $0x1b0] sm:$0xff] %v268_v56 }
  0x40   :  { %333 = vst [vmem:[%s896_s3 + $0x1b8] sm:$0xff] %v269_v59 }
  0x41   :  { %334 = vst [vmem:[%s896_s3 + $0x1c0] sm:$0xff] %v270_v61 }
  0x42   :  { %335 = vst [vmem:[%s896_s3 + $0x1c8] sm:$0xff] %v271_v63 }
  0x43   :  { %336 = vst [vmem:[%s896_s3 + $0x1d0] sm:$0xff] %v272_v0 }
  0x44   :  { %337 = vst [vmem:[%s896_s3 + $0x1d8] sm:$0xff] %v273_v4 }
  0x45   :  { %338 = vst [vmem:[%s896_s3 + $0x1e0] sm:$0xff] %v274_v5 }
  0x46   :  { %339 = vst [vmem:[%s896_s3 + $0x1e8] sm:$0xff] %v275_v6 }
  0x47   :  { %340 = vst [vmem:[%s896_s3 + $0x1f0] sm:$0xff] %v276_v2 }
  0x48   :  { %341 = vst [vmem:[%s896_s3 + $0x1f8] sm:$0xff] %v277_v7 }

// kernel: basic_conv_forward.2
= control target key start
LH: loop header
LB: loop body
LE: loop exit
PB: predicated region body
PF: predicated region fallthrough
CT: control target
= control target key end

     0   :  { %vm355_vm0 = vcmask 1041408   ;;  %vm258_vm1 = vcmask 293888   ;;  %vm730_vm2 = vcmask 1040384   ;;  %s1656_s1 = inlined_call_operand.vmem [shape: bf16[36,128], index: 1, kind: input, shape index: {}]   ;;  %s1657_s0 = inlined_call_operand.vmem [shape: bf16[512,36], index: 0, kind: input, shape index: {}]   ;;  %s1658_s2 = inlined_call_operand.vmem [shape: f32[512,128], index: 2, kind: output, shape index: {0}]   ;;  %s1659_s3 = inlined_call_operand.vmem [shape: f32[1,2,128], index: 3, kind: output, shape index: {1}]  }
   0x1   :  { %v82_v0 = vld [vmem:[%s1656_s1 + $0x10] sm:$0x3]  ;;  %v1006_v4 = vld [vmem:[%s1656_s1 + $0x8] sm:$0xff]  ;;  %v1005_v5 = vld [vmem:[%s1656_s1] sm:$0xff] }
   0x2   :  { %v252_v1 = vunpack.c.l.b16 %v82_v0  ;;  %v973_v6 = vld [vmem:[%s1657_s0] sm:$0xff]  ;;  %v974_v8 = vld [vmem:[%s1657_s0 + $0x8] sm:$0xff]  ;;  %v975_v11 = vld [vmem:[%s1657_s0 + $0x10] sm:$0xff] }
   0x3   :  { %v981_v7 = vld [vmem:[%s1657_s0 + $0x40] sm:$0xff]  ;;  %v982_v9 = vld [vmem:[%s1657_s0 + $0x48] sm:$0xff]  ;;  %v983_v12 = vld [vmem:[%s1657_s0 + $0x50] sm:$0xff] }
   0x4   :  { %v255_v2 = vpack.c.b16 %v252_v1, %v252_v1  ;;  %v989_v10 = vld [vmem:[%s1657_s0 + $0x80] sm:$0xff]  ;;  %v990_v13 = vld [vmem:[%s1657_s0 + $0x88] sm:$0xff]  ;;  %v976_v14 = vld [vmem:[%s1657_s0 + $0x18] sm:$0xff] }
   0x5   :  { %v984_v15 = vld [vmem:[%s1657_s0 + $0x58] sm:$0xff]  ;;  %v991_v16 = vld [vmem:[%s1657_s0 + $0x90] sm:$0xff]  ;;  %v997_v17 = vld [vmem:[%s1657_s0 + $0xc0] sm:$0xff] }
   0x6   :  { %v357_v3 = vsel %vm355_vm0, %v255_v2, 0  ;;  %v977_v18 = vld [vmem:[%s1657_s0 + $0x20] sm:$0xff]  ;;  %v992_v20 = vld [vmem:[%s1657_s0 + $0x98] sm:$0xff]  ;;  %v998_v21 = vld [vmem:[%s1657_s0 + $0xc8] sm:$0xff] }
   0x7   :  { %364 = vmatpush.bf16.msra.mxu0 %v357_v3  ;;  %1007 = vmatpush.bf16.msra.mxu1 %v357_v3  ;;  %v985_v19 = vld [vmem:[%s1657_s0 + $0x60] sm:$0xff]  ;;  %v978_v22 = vld [vmem:[%s1657_s0 + $0x28] sm:$0xff]  ;;  %v999_v25 = vld [vmem:[%s1657_s0 + $0xd0] sm:$0xff] }
   0x8   :  { %1008 = vmatpush.bf16.msra.mxu2 %v357_v3  ;;  %1009 = vmatpush.bf16.msra.mxu3 %v357_v3  ;;  %v986_v23 = vld [vmem:[%s1657_s0 + $0x68] sm:$0xff]  ;;  %v993_v24 = vld [vmem:[%s1657_s0 + $0xa0] sm:$0xff]  ;;  %v979_v26 = vld [vmem:[%s1657_s0 + $0x30] sm:$0xff] }
   0x9   :  { %v987_v27 = vld [vmem:[%s1657_s0 + $0x70] sm:$0xff]  ;;  %v994_v28 = vld [vmem:[%s1657_s0 + $0xa8] sm:$0xff]  ;;  %v1000_v29 = vld [vmem:[%s1657_s0 + $0xd8] sm:$0xff] }
   0xa   :  { %v980_v30 = vld [vmem:[%s1657_s0 + $0x38] sm:$0xff]  ;;  %v995_v32 = vld [vmem:[%s1657_s0 + $0xb0] sm:$0xff]  ;;  %v1001_v33 = vld [vmem:[%s1657_s0 + $0xe0] sm:$0xff] }
   0xb   :  { %365 = vmatpush.bf16.msra.mxu0 %v1006_v4  ;;  %1010 = vmatpush.bf16.msra.mxu1 %v1006_v4  ;;  %v988_v31 = vld [vmem:[%s1657_s0 + $0x78] sm:$0xff]  ;;  %v1002_v37 = vld [vmem:[%s1657_s0 + $0xe8] sm:$0xff]  ;;  %v1003_v49 = vld [vmem:[%s1657_s0 + $0xf0] sm:$0xff] }
   0xc   :  { %1011 = vmatpush.bf16.msra.mxu2 %v1006_v4  ;;  %1012 = vmatpush.bf16.msra.mxu3 %v1006_v4  ;;  %v996_v36 = vld [vmem:[%s1657_s0 + $0xb8] sm:$0xff] }
   0xd   :  { %v1004_v62 = vld [vmem:[%s1657_s0 + $0xf8] sm:$0xff] }
   0xf   :  { %366 = vmatpush.bf16.msra.mxu0 %v1005_v5  ;;  %1013 = vmatpush.bf16.msra.mxu1 %v1005_v5 }
  0x10   :  { %1014 = vmatpush.bf16.msra.mxu2 %v1005_v5  ;;  %1015 = vmatpush.bf16.msra.mxu3 %v1005_v5 }
  0x12   :  { %941 = vmatmul.msk.bf16.vlgmr.msra.gmra.mxu0 %vm258_vm1, %v973_v6  ;;  %949 = vmatmul.msk.bf16.vlgmr.msra.gmra.mxu1 %vm258_vm1, %v981_v7 }
  0x13   :  { %957 = vmatmul.msk.bf16.vlgmr.msra.gmra.mxu2 %vm258_vm1, %v989_v10  ;;  %965 = vmatmul.msk.bf16.vlgmr.msra.gmra.mxu3 %vm258_vm1, %v997_v17 }
  0x22   :  { %942 = vmatmul.msk.bf16.gmra.mxu0 %vm258_vm1, %v974_v8  ;;  %950 = vmatmul.msk.bf16.gmra.mxu1 %vm258_vm1, %v982_v9 }
  0x23   :  { %958 = vmatmul.msk.bf16.gmra.mxu2 %vm258_vm1, %v990_v13  ;;  %966 = vmatmul.msk.bf16.gmra.mxu3 %vm258_vm1, %v998_v21 }
  0x32   :  { %943 = vmatmul.msk.bf16.gmra.mxu0 %vm258_vm1, %v975_v11  ;;  %951 = vmatmul.msk.bf16.gmra.mxu1 %vm258_vm1, %v983_v12 }
  0x33   :  { %959 = vmatmul.msk.bf16.gmra.mxu2 %vm258_vm1, %v991_v16  ;;  %967 = vmatmul.msk.bf16.gmra.mxu3 %vm258_vm1, %v999_v25 }
  0x42   :  { %944 = vmatmul.msk.bf16.gmra.mxu0 %vm258_vm1, %v976_v14  ;;  %952 = vmatmul.msk.bf16.gmra.mxu1 %vm258_vm1, %v984_v15 }
  0x43   :  { %960 = vmatmul.msk.bf16.gmra.mxu2 %vm258_vm1, %v992_v20  ;;  %968 = vmatmul.msk.bf16.gmra.mxu3 %vm258_vm1, %v1000_v29 }
  0x52   :  { %945 = vmatmul.msk.bf16.gmra.mxu0 %vm258_vm1, %v977_v18  ;;  %953 = vmatmul.msk.bf16.gmra.mxu1 %vm258_vm1, %v985_v19 }
  0x53   :  { %961 = vmatmul.msk.bf16.gmra.mxu2 %vm258_vm1, %v993_v24  ;;  %969 = vmatmul.msk.bf16.gmra.mxu3 %vm258_vm1, %v1001_v33 }
  0x62   :  { %946 = vmatmul.msk.bf16.gmra.mxu0 %vm258_vm1, %v978_v22  ;;  %954 = vmatmul.msk.bf16.gmra.mxu1 %vm258_vm1, %v986_v23 }
  0x63   :  { %962 = vmatmul.msk.bf16.gmra.mxu2 %vm258_vm1, %v994_v28  ;;  %970 = vmatmul.msk.bf16.gmra.mxu3 %vm258_vm1, %v1002_v37 }
  0x72   :  { %947 = vmatmul.msk.bf16.gmra.mxu0 %vm258_vm1, %v979_v26  ;;  %955 = vmatmul.msk.bf16.gmra.mxu1 %vm258_vm1, %v987_v27 }
  0x73   :  { %963 = vmatmul.msk.bf16.gmra.mxu2 %vm258_vm1, %v995_v32  ;;  %971 = vmatmul.msk.bf16.gmra.mxu3 %vm258_vm1, %v1003_v49 }
  0x82   :  { %948 = vmatmul.msk.bf16.gmra.mxu0 %vm258_vm1, %v980_v30  ;;  %956 = vmatmul.msk.bf16.gmra.mxu1 %vm258_vm1, %v988_v31 }
  0x83   :  { %964 = vmatmul.msk.bf16.gmra.mxu2 %vm258_vm1, %v996_v36  ;;  %972 = vmatmul.msk.bf16.gmra.mxu3 %vm258_vm1, %v1004_v62 }
  0x8f   :  { %v368_v34 = vpop.f32.mrf.mxu0  ;;  %v1157_v35 = vpop.f32.mrf.mxu1 }
  0x90   :  { %733 = vst [vmem:[%s1658_s2] sm:$0xff] %v368_v34  ;;  %v597_v40 = vmul.f32 %v368_v34, %v368_v34 }
  0x91   :  { %749 = vst [vmem:[%s1658_s2 + $0x80] sm:$0xff] %v1157_v35 }
  0x96   :  { %v1201_v54 = vpop.f32.mrf.mxu2  ;;  %v1271_v8 = vpop.f32.mrf.mxu3 }
  0x97   :  { %v370_v38 = vpop.f32.mrf.mxu0  ;;  %v1174_v39 = vpop.f32.mrf.mxu1  ;;  %765 = vst [vmem:[%s1658_s2 + $0x100] sm:$0xff] %v1201_v54 }
  0x98   :  { %v528_v41 = vadd.f32 %v370_v38, %v368_v34  ;;  %v598_v42 = vmul.f32 %v370_v38, %v370_v38  ;;  %734 = vst [vmem:[%s1658_s2 + $0x8] sm:$0xff] %v370_v38 }
  0x99   :  { %750 = vst [vmem:[%s1658_s2 + $0x88] sm:$0xff] %v1174_v39 }
  0x9a   :  { %v661_v43 = vadd.f32 %v598_v42, %v597_v40  ;;  %781 = vst [vmem:[%s1658_s2 + $0x180] sm:$0xff] %v1271_v8 }
  0x9e   :  { %v1218_v60 = vpop.f32.mrf.mxu2  ;;  %v1292_v12 = vpop.f32.mrf.mxu3 }
  0x9f   :  { %v373_v44 = vpop.f32.mrf.mxu0  ;;  %v1183_v45 = vpop.f32.mrf.mxu1  ;;  %766 = vst [vmem:[%s1658_s2 + $0x108] sm:$0xff] %v1218_v60 }
  0xa0   :  { %v529_v46 = vadd.f32 %v528_v41, %v373_v44  ;;  %v599_v47 = vmul.f32 %v373_v44, %v373_v44  ;;  %735 = vst [vmem:[%s1658_s2 + $0x10] sm:$0xff] %v373_v44 }
  0xa1   :  { %751 = vst [vmem:[%s1658_s2 + $0x90] sm:$0xff] %v1183_v45 }
  0xa2   :  { %v662_v48 = vadd.f32 %v661_v43, %v599_v47  ;;  %782 = vst [vmem:[%s1658_s2 + $0x188] sm:$0xff] %v1292_v12 }
  0xa6   :  { %v1239_v1 = vpop.f32.mrf.mxu2  ;;  %v1313_v16 = vpop.f32.mrf.mxu3 }
  0xa7   :  { %v375_v50 = vpop.f32.mrf.mxu0  ;;  %v1196_v51 = vpop.f32.mrf.mxu1  ;;  %767 = vst [vmem:[%s1658_s2 + $0x110] sm:$0xff] %v1239_v1 }
  0xa8   :  { %v530_v52 = vadd.f32 %v529_v46, %v375_v50  ;;  %v600_v53 = vmul.f32 %v375_v50, %v375_v50  ;;  %736 = vst [vmem:[%s1658_s2 + $0x18] sm:$0xff] %v375_v50 }
  0xa9   :  { %752 = vst [vmem:[%s1658_s2 + $0x98] sm:$0xff] %v1196_v51 }
  0xaa   :  { %v663_v55 = vadd.f32 %v662_v48, %v600_v53  ;;  %783 = vst [vmem:[%s1658_s2 + $0x190] sm:$0xff] %v1313_v16 }
  0xae   :  { %v1254_v4 = vpop.f32.mrf.mxu2  ;;  %v1334_v20 = vpop.f32.mrf.mxu3 }
  0xaf   :  { %v378_v56 = vpop.f32.mrf.mxu0  ;;  %v1211_v57 = vpop.f32.mrf.mxu1  ;;  %768 = vst [vmem:[%s1658_s2 + $0x118] sm:$0xff] %v1254_v4 }
  0xb0   :  { %v1213_v58 = vadd.f32 %v530_v52, %v378_v56  ;;  %v601_v59 = vmul.f32 %v378_v56, %v378_v56  ;;  %737 = vst [vmem:[%s1658_s2 + $0x20] sm:$0xff] %v378_v56 }
  0xb1   :  { %753 = vst [vmem:[%s1658_s2 + $0xa0] sm:$0xff] %v1211_v57 }
  0xb2   :  { %v1224_v61 = vadd.f32 %v663_v55, %v601_v59  ;;  %784 = vst [vmem:[%s1658_s2 + $0x198] sm:$0xff] %v1334_v20 }
  0xb6   :  { %v1269_v7 = vpop.f32.mrf.mxu2  ;;  %v1355_v24 = vpop.f32.mrf.mxu3 }
  0xb7   :  { %v380_v63 = vpop.f32.mrf.mxu0  ;;  %v1234_v0 = vpop.f32.mrf.mxu1  ;;  %769 = vst [vmem:[%s1658_s2 + $0x120] sm:$0xff] %v1269_v7 }
  0xb8   :  { %738 = vst [vmem:[%s1658_s2 + $0x28] sm:$0xff] %v380_v63  ;;  %v602_v29 = vmul.f32 %v380_v63, %v380_v63  ;;  %v532_v30 = vadd.f32 %v1213_v58, %v380_v63 }
  0xb9   :  { %754 = vst [vmem:[%s1658_s2 + $0xa8] sm:$0xff] %v1234_v0 }
  0xba   :  { %785 = vst [vmem:[%s1658_s2 + $0x1a0] sm:$0xff] %v1355_v24  ;;  %v665_v32 = vadd.f32 %v1224_v61, %v602_v29 }
  0xbe   :  { %v1290_v11 = vpop.f32.mrf.mxu2  ;;  %v1376_v28 = vpop.f32.mrf.mxu3 }
  0xbf   :  { %v383_v2 = vpop.f32.mrf.mxu0  ;;  %v1249_v3 = vpop.f32.mrf.mxu1  ;;  %770 = vst [vmem:[%s1658_s2 + $0x128] sm:$0xff] %v1290_v11 }
  0xc0   :  { %739 = vst [vmem:[%s1658_s2 + $0x30] sm:$0xff] %v383_v2  ;;  %v603_v31 = vmul.f32 %v383_v2, %v383_v2  ;;  %v533_v33 = vadd.f32 %v532_v30, %v383_v2 }
  0xc1   :  { %755 = vst [vmem:[%s1658_s2 + $0xb0] sm:$0xff] %v1249_v3 }
  0xc2   :  { %786 = vst [vmem:[%s1658_s2 + $0x1a8] sm:$0xff] %v1376_v28  ;;  %v666_v38 = vadd.f32 %v665_v32, %v603_v31 }
  0xc6   :  { %v1311_v15 = vpop.f32.mrf.mxu2  ;;  %v1399_v43 = vpop.f32.mrf.mxu3 }
  0xc7   :  { %v385_v5 = vpop.f32.mrf.mxu0  ;;  %v1264_v6 = vpop.f32.mrf.mxu1  ;;  %771 = vst [vmem:[%s1658_s2 + $0x130] sm:$0xff] %v1311_v15 }
  0xc8   :  { %740 = vst [vmem:[%s1658_s2 + $0x38] sm:$0xff] %v385_v5  ;;  %v604_v34 = vmul.f32 %v385_v5, %v385_v5  ;;  %v534_v40 = vadd.f32 %v533_v33, %v385_v5 }
  0xc9   :  { %756 = vst [vmem:[%s1658_s2 + $0xb8] sm:$0xff] %v1264_v6 }
  0xca   :  { %v667_v44 = vadd.f32 %v666_v38, %v604_v34  ;;  %787 = vst [vmem:[%s1658_s2 + $0x1b0] sm:$0xff] %v1399_v43 }
  0xce   :  { %v1332_v19 = vpop.f32.mrf.mxu2  ;;  %v1420_v2 = vpop.f32.mrf.mxu3 }
  0xcf   :  { %v388_v9 = vpop.f32.mrf.mxu0  ;;  %v1285_v10 = vpop.f32.mrf.mxu1  ;;  %772 = vst [vmem:[%s1658_s2 + $0x138] sm:$0xff] %v1332_v19 }
  0xd0   :  { %741 = vst [vmem:[%s1658_s2 + $0x40] sm:$0xff] %v388_v9  ;;  %v605_v41 = vmul.f32 %v388_v9, %v388_v9  ;;  %v535_v46 = vadd.f32 %v534_v40, %v388_v9 }
  0xd1   :  { %757 = vst [vmem:[%s1658_s2 + $0xc0] sm:$0xff] %v1285_v10 }
  0xd2   :  { %v668_v48 = vadd.f32 %v667_v44, %v605_v41  ;;  %788 = vst [vmem:[%s1658_s2 + $0x1b8] sm:$0xff] %v1420_v2 }
  0xd6   :  { %v1353_v23 = vpop.f32.mrf.mxu2  ;;  %v1441_v41 = vpop.f32.mrf.mxu3 }
  0xd7   :  { %v390_v13 = vpop.f32.mrf.mxu0  ;;  %v1306_v14 = vpop.f32.mrf.mxu1  ;;  %773 = vst [vmem:[%s1658_s2 + $0x140] sm:$0xff] %v1353_v23 }
  0xd8   :  { %742 = vst [vmem:[%s1658_s2 + $0x48] sm:$0xff] %v390_v13  ;;  %v606_v47 = vmul.f32 %v390_v13, %v390_v13  ;;  %v536_v49 = vadd.f32 %v535_v46, %v390_v13 }
  0xd9   :  { %758 = vst [vmem:[%s1658_s2 + $0xc8] sm:$0xff] %v1306_v14 }
  0xda   :  { %v669_v52 = vadd.f32 %v668_v48, %v606_v47  ;;  %789 = vst [vmem:[%s1658_s2 + $0x1c0] sm:$0xff] %v1441_v41  ;;  %v614_v47 = vmul.f32 %v1174_v39, %v1174_v39 }
  0xde   :  { %v1374_v27 = vpop.f32.mrf.mxu2 }
  0xdf   :  { %v393_v17 = vpop.f32.mrf.mxu0  ;;  %v1327_v18 = vpop.f32.mrf.mxu1  ;;  %774 = vst [vmem:[%s1658_s2 + $0x148] sm:$0xff] %v1374_v27 }
  0xe0   :  { %743 = vst [vmem:[%s1658_s2 + $0x50] sm:$0xff] %v393_v17  ;;  %v607_v50 = vmul.f32 %v393_v17, %v393_v17  ;;  %v537_v53 = vadd.f32 %v536_v49, %v393_v17 }
  0xe1   :  { %759 = vst [vmem:[%s1658_s2 + $0xd0] sm:$0xff] %v1327_v18 }
  0xe2   :  { %v670_v59 = vadd.f32 %v669_v52, %v607_v50 }
  0xe6   :  { %v1397_v42 = vpop.f32.mrf.mxu2 }
  0xe7   :  { %v395_v21 = vpop.f32.mrf.mxu0  ;;  %v1348_v22 = vpop.f32.mrf.mxu1  ;;  %775 = vst [vmem:[%s1658_s2 + $0x150] sm:$0xff] %v1397_v42 }
  0xe8   :  { %744 = vst [vmem:[%s1658_s2 + $0x58] sm:$0xff] %v395_v21  ;;  %v608_v55 = vmul.f32 %v395_v21, %v395_v21  ;;  %v538_v61 = vadd.f32 %v537_v53, %v395_v21  ;;  %v616_v53 = vmul.f32 %v1196_v51, %v1196_v51 }
  0xe9   :  { %760 = vst [vmem:[%s1658_s2 + $0xd8] sm:$0xff] %v1348_v22 }
  0xea   :  { %v671_v5 = vadd.f32 %v670_v59, %v608_v55 }
  0xee   :  { %v1418_v63 = vpop.f32.mrf.mxu2 }
  0xef   :  { %v398_v25 = vpop.f32.mrf.mxu0  ;;  %v1369_v26 = vpop.f32.mrf.mxu1  ;;  %776 = vst [vmem:[%s1658_s2 + $0x158] sm:$0xff] %v1418_v63 }
  0xf0   :  { %745 = vst [vmem:[%s1658_s2 + $0x60] sm:$0xff] %v398_v25  ;;  %v609_v62 = vmul.f32 %v398_v25, %v398_v25  ;;  %v539_v9 = vadd.f32 %v538_v61, %v398_v25  ;;  %v1469_v61 = vpop.f32.mrf.mxu3 }
  0xf1   :  { %761 = vst [vmem:[%s1658_s2 + $0xe0] sm:$0xff] %v1369_v26 }
  0xf2   :  { %v672_v17 = vadd.f32 %v671_v5, %v609_v62  ;;  %790 = vst [vmem:[%s1658_s2 + $0x1c8] sm:$0xff] %v1469_v61 }
  0xf6   :  { %v1439_v40 = vpop.f32.mrf.mxu2 }
  0xf7   :  { %v400_v36 = vpop.f32.mrf.mxu0  ;;  %v1392_v37 = vpop.f32.mrf.mxu1  ;;  %777 = vst [vmem:[%s1658_s2 + $0x160] sm:$0xff] %v1439_v40 }
  0xf8   :  { %746 = vst [vmem:[%s1658_s2 + $0x68] sm:$0xff] %v400_v36  ;;  %v610_v13 = vmul.f32 %v400_v36, %v400_v36  ;;  %v540_v21 = vadd.f32 %v539_v9, %v400_v36  ;;  %v613_v36 = vmul.f32 %v1157_v35, %v1157_v35 }
  0xf9   :  { %762 = vst [vmem:[%s1658_s2 + $0xe8] sm:$0xff] %v1392_v37 }
  0xfa   :  { %v673_v30 = vadd.f32 %v672_v17, %v610_v13  ;;  %v619_v13 = vmul.f32 %v1249_v3, %v1249_v3 }
  0xfe   :  { %v1467_v59 = vpop.f32.mrf.mxu2 }
  0xff   :  { %v403_v56 = vpop.f32.mrf.mxu0  ;;  %v1413_v58 = vpop.f32.mrf.mxu1  ;;  %778 = vst [vmem:[%s1658_s2 + $0x168] sm:$0xff] %v1467_v59 }
 0x100   :  { %747 = vst [vmem:[%s1658_s2 + $0x70] sm:$0xff] %v403_v56  ;;  %v611_v29 = vmul.f32 %v403_v56, %v403_v56  ;;  %v541_v31 = vadd.f32 %v540_v21, %v403_v56 }
 0x101   :  { %763 = vst [vmem:[%s1658_s2 + $0xf0] sm:$0xff] %v1413_v58 }
 0x102   :  { %v674_v25 = vadd.f32 %v673_v30, %v611_v29 }
 0x107   :  { %v405_v32 = vpop.f32.mrf.mxu0  ;;  %v1434_v33 = vpop.f32.mrf.mxu1 }
 0x108   :  { %v542_v34 = vadd.f32 %v541_v31, %v405_v32  ;;  %v612_v38 = vmul.f32 %v405_v32, %v405_v32  ;;  %748 = vst [vmem:[%s1658_s2 + $0x78] sm:$0xff] %v405_v32  ;;  %v1491_v31 = vpop.f32.mrf.mxu2  ;;  %v1493_v32 = vpop.f32.mrf.mxu3 }
 0x109   :  { %764 = vst [vmem:[%s1658_s2 + $0xf8] sm:$0xff] %v1434_v33 }
 0x10a   :  { %v543_v44 = vadd.f32 %v542_v34, %v1157_v35  ;;  %v675_v46 = vadd.f32 %v674_v25, %v612_v38  ;;  %v615_v35 = vmul.f32 %v1183_v45, %v1183_v45  ;;  %779 = vst [vmem:[%s1658_s2 + $0x170] sm:$0xff] %v1491_v31 }
 0x10b   :  { %791 = vst [vmem:[%s1658_s2 + $0x1d0] sm:$0xff] %v1493_v32 }
 0x10c   :  { %v544_v48 = vadd.f32 %v543_v44, %v1174_v39  ;;  %v676_v49 = vadd.f32 %v675_v46, %v613_v36  ;;  %v617_v39 = vmul.f32 %v1211_v57, %v1211_v57  ;;  %v623_v36 = vmul.f32 %v1327_v18, %v1327_v18 }
 0x10e   :  { %v545_v50 = vadd.f32 %v544_v48, %v1183_v45  ;;  %v677_v52 = vadd.f32 %v676_v49, %v614_v47 }
 0x110   :  { %v546_v55 = vadd.f32 %v545_v50, %v1196_v51  ;;  %v678_v56 = vadd.f32 %v677_v52, %v615_v35  ;;  %v618_v51 = vmul.f32 %v1234_v0, %v1234_v0  ;;  %v1515_v49 = vpop.f32.mrf.mxu2  ;;  %v1517_v35 = vpop.f32.mrf.mxu3 }
 0x111   :  { %780 = vst [vmem:[%s1658_s2 + $0x178] sm:$0xff] %v1515_v49 }
 0x112   :  { %v547_v45 = vadd.f32 %v546_v55, %v1211_v57  ;;  %v679_v62 = vadd.f32 %v678_v56, %v616_v53  ;;  %v620_v57 = vmul.f32 %v1264_v6, %v1264_v6  ;;  %792 = vst [vmem:[%s1658_s2 + $0x1d8] sm:$0xff] %v1517_v35  ;;  %v626_v53 = vmul.f32 %v1392_v37, %v1392_v37 }
 0x114   :  { %v548_v5 = vadd.f32 %v547_v45, %v1234_v0  ;;  %v680_v9 = vadd.f32 %v679_v62, %v617_v39  ;;  %v621_v0 = vmul.f32 %v1285_v10, %v1285_v10  ;;  %v627_v39 = vmul.f32 %v1413_v58, %v1413_v58 }
 0x115   :  { %v628_v62 = vmul.f32 %v1434_v33, %v1434_v33 }
 0x116   :  { %v681_v17 = vadd.f32 %v680_v9, %v618_v51  ;;  %v549_v21 = vadd.f32 %v548_v5, %v1249_v3 }
 0x118   :  { %v550_v29 = vadd.f32 %v549_v21, %v1264_v6  ;;  %v682_v30 = vadd.f32 %v681_v17, %v619_v13  ;;  %v622_v6 = vmul.f32 %v1306_v14, %v1306_v14  ;;  %v1539_v51 = vpop.f32.mrf.mxu3 }
 0x119   :  { %793 = vst [vmem:[%s1658_s2 + $0x1e0] sm:$0xff] %v1539_v51 }
 0x11a   :  { %v551_v3 = vadd.f32 %v550_v29, %v1285_v10  ;;  %v683_v25 = vadd.f32 %v682_v30, %v620_v57  ;;  %v624_v10 = vmul.f32 %v1348_v22, %v1348_v22  ;;  %v632_v29 = vmul.f32 %v1254_v4, %v1254_v4 }
 0x11c   :  { %v552_v34 = vadd.f32 %v551_v3, %v1306_v14  ;;  %v684_v38 = vadd.f32 %v683_v25, %v621_v0  ;;  %v634_v25 = vmul.f32 %v1290_v11, %v1290_v11 }
 0x11e   :  { %v553_v44 = vadd.f32 %v552_v34, %v1327_v18  ;;  %v685_v46 = vadd.f32 %v684_v38, %v622_v6  ;;  %v625_v18 = vmul.f32 %v1369_v26, %v1369_v26  ;;  %v635_v34 = vmul.f32 %v1311_v15, %v1311_v15 }
 0x120   :  { %v554_v47 = vadd.f32 %v553_v44, %v1348_v22  ;;  %v686_v48 = vadd.f32 %v685_v46, %v623_v36  ;;  %v636_v44 = vmul.f32 %v1332_v19, %v1332_v19 }
 0x122   :  { %v555_v14 = vadd.f32 %v554_v47, %v1369_v26  ;;  %v687_v50 = vadd.f32 %v686_v48, %v624_v10 }
 0x124   :  { %v688_v22 = vadd.f32 %v687_v50, %v625_v18  ;;  %v556_v52 = vadd.f32 %v555_v14, %v1392_v37  ;;  %v629_v37 = vmul.f32 %v1201_v54, %v1201_v54  ;;  %v639_v18 = vmul.f32 %v1397_v42, %v1397_v42 }
 0x126   :  { %v689_v55 = vadd.f32 %v688_v22, %v626_v53  ;;  %v557_v56 = vadd.f32 %v556_v52, %v1413_v58  ;;  %v630_v58 = vmul.f32 %v1218_v60, %v1218_v60  ;;  %v640_v53 = vmul.f32 %v1418_v63, %v1418_v63 }
 0x128   :  { %v690_v45 = vadd.f32 %v689_v55, %v627_v39  ;;  %v558_v26 = vadd.f32 %v557_v56, %v1434_v33  ;;  %v631_v33 = vmul.f32 %v1239_v1, %v1239_v1  ;;  %v641_v39 = vmul.f32 %v1439_v40, %v1439_v40 }
 0x12a   :  { %v559_v5 = vadd.f32 %v558_v26, %v1201_v54  ;;  %v691_v9 = vadd.f32 %v690_v45, %v628_v62  ;;  %v1557_v54 = vpop.f32.mrf.mxu3  ;;  %v642_v26 = vmul.f32 %v1467_v59, %v1467_v59 }
 0x12b   :  { %794 = vst [vmem:[%s1658_s2 + $0x1e8] sm:$0xff] %v1557_v54 }
 0x12c   :  { %v560_v13 = vadd.f32 %v559_v5, %v1218_v60  ;;  %v692_v17 = vadd.f32 %v691_v9, %v629_v37  ;;  %v633_v60 = vmul.f32 %v1269_v7, %v1269_v7  ;;  %v643_v37 = vmul.f32 %v1491_v31, %v1491_v31 }
 0x12e   :  { %v561_v21 = vadd.f32 %v560_v13, %v1239_v1  ;;  %v693_v57 = vadd.f32 %v692_v17, %v630_v58  ;;  %v644_v58 = vmul.f32 %v1515_v49, %v1515_v49 }
 0x130   :  { %v562_v30 = vadd.f32 %v561_v21, %v1254_v4  ;;  %v694_v0 = vadd.f32 %v693_v57, %v631_v33 }
 0x132   :  { %v563_v3 = vadd.f32 %v562_v30, %v1269_v7  ;;  %v695_v1 = vadd.f32 %v694_v0, %v632_v29  ;;  %v1575_v7 = vpop.f32.mrf.mxu3 }
 0x133   :  { %795 = vst [vmem:[%s1658_s2 + $0x1f0] sm:$0xff] %v1575_v7 }
 0x134   :  { %v564_v6 = vadd.f32 %v563_v3, %v1290_v11  ;;  %v696_v4 = vadd.f32 %v695_v1, %v633_v60  ;;  %v637_v11 = vmul.f32 %v1353_v23, %v1353_v23 }
 0x136   :  { %v697_v38 = vadd.f32 %v696_v4, %v634_v25  ;;  %v565_v36 = vadd.f32 %v564_v6, %v1311_v15  ;;  %v638_v15 = vmul.f32 %v1374_v27, %v1374_v27 }
 0x138   :  { %v566_v46 = vadd.f32 %v565_v36, %v1332_v19  ;;  %v698_v10 = vadd.f32 %v697_v38, %v635_v34 }
 0x13a   :  { %v567_v47 = vadd.f32 %v566_v46, %v1353_v23  ;;  %v699_v48 = vadd.f32 %v698_v10, %v636_v44  ;;  %v525_v23 = vpop.f32.mrf.mxu3 }
 0x13b   :  { %796 = vst [vmem:[%s1658_s2 + $0x1f8] sm:$0xff] %v525_v23 }
 0x13c   :  { %v568_v14 = vadd.f32 %v567_v47, %v1374_v27  ;;  %v700_v19 = vadd.f32 %v699_v48, %v637_v11  ;;  %v656_v48 = vmul.f32 %v1517_v35, %v1517_v35 }
 0x13e   :  { %v569_v50 = vadd.f32 %v568_v14, %v1397_v42  ;;  %v701_v22 = vadd.f32 %v700_v19, %v638_v15  ;;  %v657_v19 = vmul.f32 %v1539_v51, %v1539_v51 }
 0x140   :  { %v570_v52 = vadd.f32 %v569_v50, %v1418_v63  ;;  %v702_v55 = vadd.f32 %v701_v22, %v639_v18  ;;  %v658_v50 = vmul.f32 %v1557_v54, %v1557_v54 }
 0x142   :  { %v703_v56 = vadd.f32 %v702_v55, %v640_v53  ;;  %v571_v27 = vadd.f32 %v570_v52, %v1439_v40  ;;  %v645_v40 = vmul.f32 %v1271_v8, %v1271_v8  ;;  %v659_v52 = vmul.f32 %v1575_v7, %v1575_v7 }
 0x143   :  { %v660_v55 = vmul.f32 %v525_v23, %v525_v23 }
 0x144   :  { %v704_v45 = vadd.f32 %v703_v56, %v641_v39  ;;  %v572_v42 = vadd.f32 %v571_v27, %v1467_v59  ;;  %v646_v59 = vmul.f32 %v1292_v12, %v1292_v12 }
 0x146   :  { %v705_v62 = vadd.f32 %v704_v45, %v642_v26  ;;  %v573_v63 = vadd.f32 %v572_v42, %v1491_v31  ;;  %v647_v31 = vmul.f32 %v1313_v16, %v1313_v16 }
 0x148   :  { %v706_v5 = vadd.f32 %v705_v62, %v643_v37  ;;  %v574_v9 = vadd.f32 %v573_v63, %v1515_v49  ;;  %v648_v49 = vmul.f32 %v1334_v20, %v1334_v20 }
 0x14a   :  { %v575_v13 = vadd.f32 %v574_v9, %v1271_v8  ;;  %v707_v17 = vadd.f32 %v706_v5, %v644_v58  ;;  %v649_v8 = vmul.f32 %v1355_v24, %v1355_v24 }
 0x14c   :  { %v576_v33 = vadd.f32 %v575_v13, %v1292_v12  ;;  %v708_v21 = vadd.f32 %v707_v17, %v645_v40  ;;  %v650_v12 = vmul.f32 %v1376_v28, %v1376_v28 }
 0x14e   :  { %v577_v57 = vadd.f32 %v576_v33, %v1313_v16  ;;  %v709_v29 = vadd.f32 %v708_v21, %v646_v59  ;;  %v651_v16 = vmul.f32 %v1399_v43, %v1399_v43 }
 0x150   :  { %v578_v30 = vadd.f32 %v577_v57, %v1334_v20  ;;  %v710_v0 = vadd.f32 %v709_v29, %v647_v31  ;;  %v652_v20 = vmul.f32 %v1420_v2, %v1420_v2 }
 0x152   :  { %v579_v60 = vadd.f32 %v578_v30, %v1355_v24  ;;  %v711_v3 = vadd.f32 %v710_v0, %v648_v49  ;;  %v653_v24 = vmul.f32 %v1441_v41, %v1441_v41 }
 0x154   :  { %v580_v1 = vadd.f32 %v579_v60, %v1376_v28  ;;  %v712_v25 = vadd.f32 %v711_v3, %v649_v8  ;;  %v654_v28 = vmul.f32 %v1469_v61, %v1469_v61 }
 0x156   :  { %v713_v6 = vadd.f32 %v712_v25, %v650_v12  ;;  %v581_v4 = vadd.f32 %v580_v1, %v1399_v43  ;;  %v655_v43 = vmul.f32 %v1493_v32, %v1493_v32 }
 0x158   :  { %v582_v34 = vadd.f32 %v581_v4, %v1420_v2  ;;  %v714_v38 = vadd.f32 %v713_v6, %v651_v16 }
 0x15a   :  { %v583_v36 = vadd.f32 %v582_v34, %v1441_v41  ;;  %v715_v44 = vadd.f32 %v714_v38, %v652_v20 }
 0x15c   :  { %v584_v46 = vadd.f32 %v583_v36, %v1469_v61  ;;  %v716_v10 = vadd.f32 %v715_v44, %v653_v24 }
 0x15e   :  { %v585_v11 = vadd.f32 %v584_v46, %v1493_v32  ;;  %v717_v47 = vadd.f32 %v716_v10, %v654_v28 }
 0x160   :  { %v586_v2 = vadd.f32 %v585_v11, %v1517_v35  ;;  %v718_v15 = vadd.f32 %v717_v47, %v655_v43 }
 0x162   :  { %v719_v41 = vadd.f32 %v718_v15, %v656_v48  ;;  %v587_v14 = vadd.f32 %v586_v2, %v1539_v51 }
 0x164   :  { %v720_v61 = vadd.f32 %v719_v41, %v657_v19  ;;  %v588_v18 = vadd.f32 %v587_v14, %v1557_v54 }
 0x166   :  { %v721_v32 = vadd.f32 %v720_v61, %v658_v50  ;;  %v589_v22 = vadd.f32 %v588_v18, %v1575_v7 }
 0x168   :  { %v722_v35 = vadd.f32 %v721_v32, %v659_v52  ;;  %v590_v53 = vadd.f32 %v589_v22, %v525_v23 }
 0x16a   :  { %v591_v56 = vrot.slane %v590_v53, 4  ;;  %v723_v27 = vadd.f32 %v722_v35, %v660_v55 }
 0x16c   :  { %v592_v39 = vadd.f32 %v591_v56, %v590_v53  ;;  %v724_v45 = vrot.slane %v723_v27, 4 }
 0x16e   :  { %v593_v51 = vrot.slane %v592_v39, 2  ;;  %v725_v42 = vadd.f32 %v724_v45, %v723_v27 }
 0x170   :  { %v594_v26 = vadd.f32 %v593_v51, %v592_v39  ;;  %v726_v62 = vrot.slane %v725_v42, 2 }
 0x172   :  { %v595_v63 = vrot.slane %v594_v26, 1  ;;  %v727_v37 = vadd.f32 %v726_v62, %v725_v42 }
 0x174   :  { %v728_v54 = vrot.slane %v727_v37, 1  ;;  %v596_v5 = vadd.f32 %v595_v63, %v594_v26 }
 0x176   :  { %v729_v9 = vadd.f32 %v728_v54, %v727_v37 }
 0x178   :  { %v731_v58 = vsel %vm730_vm2, %v596_v5, %v729_v9 }
 0x179   :  { %732 = vst [vmem:[%s1659_s3] sm:$0x3] %v731_v58 }

</bundles_post_ra>
